<compile_context>
chip_gen: v7x
topology: tpu7x:2x2x1
jax: 0.10.0
libtpu: 0.0.40
codegen_flags: <defaults>
</compile_context>

<pallas_src>
import numpy as np
import jax
import jax.numpy as jnp
from jax.experimental import pallas as pl
from jax.experimental.pallas import tpu as pltpu


def _transition_kernel(x_ref, scale_ref, bias_ref, w_ref, o_ref):
    # x_ref     : (MT, 4*Cp) bf16 -- lane quarters = [dh0dw0 | dh0dw1 | dh1dw0 | dh1dw1]
    # scale_ref : (1, 4*Cp) f32   -- folded BN scale, tiled over the 4 taps
    # bias_ref  : (1, 4*Cp) f32   -- folded BN bias,  tiled over the 4 taps
    # w_ref     : (Cp, Coutp) bf16 -- 1x1 conv weight (Cin, Cout) padded, * 0.25
    # o_ref     : (MT, Coutp) f32
    x = x_ref[...].astype(jnp.float32)                      # VPU math in f32
    y = jnp.maximum(x * scale_ref[0] + bias_ref[0], 0.0)    # BN (folded) + ReLU

    # 2x2 average pool = sum of the four lane-aligned channel quarters
    # (the 1/4 factor is folded into the weight).
    cp = w_ref.shape[0]
    p = y[:, :cp] + y[:, cp:2 * cp] + y[:, 2 * cp:3 * cp] + y[:, 3 * cp:]

    # 1x1 conv == channel matmul on the MXU (bf16 in, f32 accumulate).
    o_ref[...] = jnp.dot(p.astype(jnp.bfloat16), w_ref[...],
                         preferred_element_type=jnp.float32)


def _round_up(v, m):
    return (v + m - 1) // m * m


def _vmem_budget():
    """Generation-aware total-resident-VMEM budget + compiler limit (bytes)."""
    try:
        cap = int(pltpu.get_tpu_info().vmem_capacity_bytes)
    except Exception:  # conservative fallback (safe on v5e/v6e/v7x)
        cap = 64 << 20
    budget = min(cap * 3 // 4, 96 << 20)          # ~48 MiB on v7x, ~96 MiB on v5e/v6e
    vmem_limit = int(min(cap - (4 << 20), budget + (16 << 20)))
    return int(budget), vmem_limit


def _pick_row_tile(m_total, in_row_bytes, out_row_bytes, fixed_bytes, budget):
    """Rows (pooled pixels) per block.  Budget covers 2x(in+out) blocks
    (double buffering) plus the fixed-resident weight / scale / bias buffers."""
    per_row = 2 * (in_row_bytes + out_row_bytes)
    avail = budget - fixed_bytes
    mt = max(8, (avail // per_row) // 8 * 8) if avail > per_row * 8 else 8
    # keep >=2 grid steps when there is enough work (v7x has 2 TensorCores)
    # and avoid padding far past the problem size.
    half = max(8, -(-m_total // 2))
    half = (half + 7) // 8 * 8
    return int(min(mt, half, 4096))


def _const_block_spec(block_shape):
    """BlockSpec for a constant-index operand; single-buffered if supported."""
    nd = len(block_shape)

    def index_map(i):
        return (0,) * nd

    if hasattr(pl, "Buffered"):
        try:
            return pl.BlockSpec(block_shape, index_map,
                                pipeline_mode=pl.Buffered(1))
        except TypeError:
            pass
    return pl.BlockSpec(block_shape, index_map)


def _transition_forward(x_nchw, gamma, beta, running_mean, running_var, eps, conv_w):
    """x_nchw: (N, Cin, H, W) f32.  conv_w: (Cout, Cin) (1x1 kernel squeezed).
    Returns (N, Cout, H//2, W//2) f32, matching the PyTorch module."""
    N, Cin, H, W = x_nchw.shape
    Cout = conv_w.shape[0]
    He, We = (H // 2) * 2, (W // 2) * 2          # avg_pool2d(2) drops odd tail
    Hp, Wp = He // 2, We // 2

    Cp = _round_up(Cin, 128)
    Coutp = _round_up(Cout, 128)

    # Fold BatchNorm (inference mode) into a per-channel affine.
    scale = gamma / jnp.sqrt(running_var + eps)                  # (Cin,)
    bias = beta - running_mean * scale                           # (Cin,)

    # Stage NCHW -> (N, Hp, Wp, dh, dw, C) in bf16, channels padded to Cp.
    # One materialized relayout; the slice, bf16 cast and channel pad fuse into
    # it under jit.  The final reshape to rows is a pure view.
    x6 = x_nchw[:, :, :He, :We].reshape(N, Cin, Hp, 2, Wp, 2)
    x6 = jnp.transpose(x6, (0, 2, 4, 3, 5, 1)).astype(jnp.bfloat16)
    x6 = jnp.pad(x6, ((0, 0),) * 5 + ((0, Cp - Cin),))
    m_total = N * Hp * Wp
    x_rows = x6.reshape(m_total, 4 * Cp)                         # pure view

    scale_p = jnp.pad(scale, (0, Cp - Cin))
    bias_p = jnp.pad(bias, (0, Cp - Cin))
    scale4 = jnp.tile(scale_p, 4)[None, :]                       # (1, 4Cp)
    bias4 = jnp.tile(bias_p, 4)[None, :]                         # (1, 4Cp)

    # 1x1 conv weight, (Cin, Cout) padded, with the exact 0.25 pool factor folded in.
    w = jnp.transpose(conv_w, (1, 0)) * 0.25
    w_p = jnp.pad(w, ((0, Cp - Cin), (0, Coutp - Cout))).astype(jnp.bfloat16)

    # Tiling: 1-D grid over pooled pixels; honest VMEM accounting.
    in_row_bytes = 4 * Cp * 2                 # bf16 input row
    out_row_bytes = Coutp * 4                 # f32 output row
    fixed_bytes = 2 * Cp * Coutp * 2 + 2 * 2 * (4 * Cp * 4)   # 2x weight + scale/bias
    budget, vmem_limit = _vmem_budget()
    MT = _pick_row_tile(m_total, in_row_bytes, out_row_bytes, fixed_bytes, budget)
    m_pad = -(-m_total // MT) * MT
    x_rows = jnp.pad(x_rows, ((0, m_pad - m_total), (0, 0)))
    grid = (m_pad // MT,)

    flops = 2 * m_pad * Cp * Coutp
    bytes_accessed = (m_pad * 4 * Cp * 2 + m_pad * Coutp * 4
                      + Cp * Coutp * 2 + 2 * 4 * Cp * 4)

    out_p = pl.pallas_call(
        _transition_kernel,
        out_shape=jax.ShapeDtypeStruct((m_pad, Coutp), jnp.float32),
        grid_spec=pltpu.PrefetchScalarGridSpec(
            num_scalar_prefetch=0,
            grid=grid,
            in_specs=[
                pl.BlockSpec((MT, 4 * Cp), lambda i: (i, 0)),
                _const_block_spec((1, 4 * Cp)),
                _const_block_spec((1, 4 * Cp)),
                _const_block_spec((Cp, Coutp)),
            ],
            out_specs=pl.BlockSpec((MT, Coutp), lambda i: (i, 0)),
        ),
        compiler_params=pltpu.CompilerParams(
            dimension_semantics=("parallel",),
            vmem_limit_bytes=vmem_limit),
        cost_estimate=pl.CostEstimate(flops=int(flops), transcendentals=0,
                                      bytes_accessed=int(bytes_accessed)),
    )(x_rows, scale4, bias4, w_p)

    out = out_p[:m_total, :Cout].reshape(N, Hp, Wp, Cout)
    return jnp.transpose(out, (0, 3, 1, 2))                      # NHWC -> NCHW


# Jit the whole wrapper so the staging transpose / pad / bf16 cast and the
# output slice + transpose fuse around the custom call.
transition_forward = jax.jit(_transition_forward)


def _reference(x_nchw, gamma, beta, running_mean, running_var, eps, conv_w):
    scale = gamma / jnp.sqrt(running_var + eps)
    bias = beta - running_mean * scale
    y = jnp.maximum(x_nchw * scale[None, :, None, None]
                    + bias[None, :, None, None], 0.0)
    z = jnp.einsum('nchw,oc->nohw', y, conv_w)
    N, Co, H, W = z.shape
    return z.reshape(N, Co, H // 2, 2, W // 2, 2).mean(axis=(3, 5))


if __name__ == "__main__":
    key = jax.random.PRNGKey(0)
    N, Cin, Cout, H, W = 2, 8, 4, 16, 16
    eps = 1e-5

    k_x, k_w, k_g, k_b, k_m, k_v = jax.random.split(key, 6)
    x = jax.random.normal(k_x, (N, Cin, H, W), jnp.float32)
    # Conv2d(in, out, 1, bias=False) -> weight (Cout, Cin, 1, 1); squeezed to (Cout, Cin)
    conv_w = jax.random.normal(k_w, (Cout, Cin), jnp.float32) * (1.0 / np.sqrt(Cin))
    # BatchNorm2d(in_planes) params / running stats (inference mode)
    gamma = 1.0 + 0.1 * jax.random.normal(k_g, (Cin,), jnp.float32)
    beta = 0.1 * jax.random.normal(k_b, (Cin,), jnp.float32)
    running_mean = 0.1 * jax.random.normal(k_m, (Cin,), jnp.float32)
    running_var = 1.0 + 0.1 * jax.random.uniform(k_v, (Cin,), jnp.float32)

    out = transition_forward(x, gamma, beta, running_mean, running_var, eps, conv_w)
    out = jax.block_until_ready(out)

    ref = _reference(x, gamma, beta, running_mean, running_var, eps, conv_w)
    assert out.shape == (N, Cout, H // 2, W // 2), out.shape
    # bf16 staged activations + bf16 matmul inputs (f32 accumulate) -> tolerance check.
    np.testing.assert_allclose(np.asarray(out), np.asarray(ref), atol=3e-2, rtol=3e-2)

    print("KERNEL_OK")
</pallas_src>

<mosaic_0001>
module attributes {stable_mosaic.version = 11 : i64} {
  func.func @_transition_kernel(%arg0: i32, %arg1: memref<64x512xbf16, #tpu.memory_space<vmem>>, %arg2: memref<1x512xf32, #tpu.memory_space<vmem>>, %arg3: memref<1x512xf32, #tpu.memory_space<vmem>>, %arg4: memref<128x128xbf16, #tpu.memory_space<vmem>>, %arg5: memref<64x128xf32, #tpu.memory_space<vmem>>) attributes {dimension_semantics = [#tpu.dimension_semantics<parallel>], iteration_bounds = array<i64: 2>, scalar_prefetch = 0 : i64, scratch_operands = 0 : i64, tpu.core_type = #tpu.core_type<tc>, window_params = [{transform_indices = @transform_0, window_bounds = array<i64: 64, 512>}, {pipeline_mode = #tpu.pipeline_mode<synchronous>, transform_indices = @transform_1, window_bounds = array<i64: 1, 512>}, {pipeline_mode = #tpu.pipeline_mode<synchronous>, transform_indices = @transform_2, window_bounds = array<i64: 1, 512>}, {pipeline_mode = #tpu.pipeline_mode<synchronous>, transform_indices = @transform_3, window_bounds = array<i64: 128, 128>}, {transform_indices = @transform_4, window_bounds = array<i64: 64, 128>}]} {
    %c0 = arith.constant 0 : index
    %c0_0 = arith.constant 0 : index
    %0 = vector.load %arg1[%c0, %c0_0] : memref<64x512xbf16, #tpu.memory_space<vmem>>, vector<64x512xbf16>
    %1 = arith.extf %0 : vector<64x512xbf16> to vector<64x512xf32>
    %c0_1 = arith.constant 0 : index
    %c0_2 = arith.constant 0 : index
    %2 = vector.load %arg2[%c0_1, %c0_2] : memref<1x512xf32, #tpu.memory_space<vmem>>, vector<1x512xf32>
    %3 = vector.shape_cast %2 : vector<1x512xf32> to vector<512xf32>
    %4 = vector.shape_cast %3 : vector<512xf32> to vector<1x512xf32>
    %5 = vector.broadcast %4 : vector<1x512xf32> to vector<64x512xf32>
    %6 = arith.mulf %1, %5 : vector<64x512xf32>
    %c0_3 = arith.constant 0 : index
    %c0_4 = arith.constant 0 : index
    %7 = vector.load %arg3[%c0_3, %c0_4] : memref<1x512xf32, #tpu.memory_space<vmem>>, vector<1x512xf32>
    %8 = vector.shape_cast %7 : vector<1x512xf32> to vector<512xf32>
    %9 = vector.shape_cast %8 : vector<512xf32> to vector<1x512xf32>
    %10 = vector.broadcast %9 : vector<1x512xf32> to vector<64x512xf32>
    %11 = arith.addf %6, %10 : vector<64x512xf32>
    %cst = arith.constant 0.000000e+00 : f32
    %12 = vector.broadcast %cst : f32 to vector<64x512xf32>
    %13 = arith.maximumf %11, %12 : vector<64x512xf32>
    %14 = vector.extract_strided_slice %13 {offsets = [0, 0], sizes = [64, 128], strides = [1, 1]} : vector<64x512xf32> to vector<64x128xf32>
    %15 = vector.extract_strided_slice %13 {offsets = [0, 128], sizes = [64, 128], strides = [1, 1]} : vector<64x512xf32> to vector<64x128xf32>
    %16 = arith.addf %14, %15 : vector<64x128xf32>
    %17 = vector.extract_strided_slice %13 {offsets = [0, 256], sizes = [64, 128], strides = [1, 1]} : vector<64x512xf32> to vector<64x128xf32>
    %18 = arith.addf %16, %17 : vector<64x128xf32>
    %19 = vector.extract_strided_slice %13 {offsets = [0, 384], sizes = [64, 128], strides = [1, 1]} : vector<64x512xf32> to vector<64x128xf32>
    %20 = arith.addf %18, %19 : vector<64x128xf32>
    %21 = arith.truncf %20 : vector<64x128xf32> to vector<64x128xbf16>
    %c0_5 = arith.constant 0 : index
    %c0_6 = arith.constant 0 : index
    %22 = vector.load %arg4[%c0_5, %c0_6] : memref<128x128xbf16, #tpu.memory_space<vmem>>, vector<128x128xbf16>
    %cst_7 = arith.constant dense<0.000000e+00> : vector<64x128xf32>
    %23 = tpu.matmul %21, %22, %cst_7 {dimension_numbers = #tpu.dot_dimension_numbers<[1], [0], [0], [1], [0, 0, 1, 1], [], []>} : vector<64x128xbf16>, vector<128x128xbf16>, vector<64x128xf32> -> vector<64x128xf32>
    %c0_8 = arith.constant 0 : index
    %c0_9 = arith.constant 0 : index
    %24 = vector.load %arg5[%c0_8, %c0_9] : memref<64x128xf32, #tpu.memory_space<vmem>>, vector<64x128xf32>
    tpu.vector_store %arg5[%c0_8, %c0_9], %23 {strides = array<i32>} : memref<64x128xf32, #tpu.memory_space<vmem>>, vector<64x128xf32>,
    return
  }
  func.func @transform_0(%arg0: i32) -> (i32, i32) {
    %c0_i32 = arith.constant 0 : i32
    %c0_i32_0 = arith.constant 0 : i32
    return %arg0, %c0_i32 : i32, i32
  }
  func.func @transform_1(%arg0: i32) -> (i32, i32) {
    %c0_i32 = arith.constant 0 : i32
    %c0_i32_0 = arith.constant 0 : i32
    %c0_i32_1 = arith.constant 0 : i32
    return %c0_i32, %c0_i32_0 : i32, i32
  }
  func.func @transform_2(%arg0: i32) -> (i32, i32) {
    %c0_i32 = arith.constant 0 : i32
    %c0_i32_0 = arith.constant 0 : i32
    %c0_i32_1 = arith.constant 0 : i32
    return %c0_i32, %c0_i32_0 : i32, i32
  }
  func.func @transform_3(%arg0: i32) -> (i32, i32) {
    %c0_i32 = arith.constant 0 : i32
    %c0_i32_0 = arith.constant 0 : i32
    %c0_i32_1 = arith.constant 0 : i32
    return %c0_i32, %c0_i32_0 : i32, i32
  }
  func.func @transform_4(%arg0: i32) -> (i32, i32) {
    %c0_i32 = arith.constant 0 : i32
    %c0_i32_0 = arith.constant 0 : i32
    return %arg0, %c0_i32 : i32, i32
  }
}

</mosaic_0001>

<bundles_post_ra>
// kernel: tile.13
= control target key start
LH: loop header
LB: loop body
LE: loop exit
PB: predicated region body
PF: predicated region fallthrough
CT: control target
= control target key end

     0   :  { %s22_s0 = inlined_call_operand.vmem [shape: f32[128], index: 0, kind: input, shape index: {}]   ;;  %s23_s1 = inlined_call_operand.vmem [shape: f32[4,128], index: 1, kind: output, shape index: {}]  }
   0x1   :  { %v4_v0 = vld [vmem:[%s22_s0] ss:$0 sm:$0xff] }
   0x2   :  { %5 = vst [vmem:[%s23_s1] sm:$0xf] %v4_v0 }

// kernel: _transition_forward.1
= control target key start
LH: loop header
LB: loop body
LE: loop exit
PB: predicated region body
PF: predicated region fallthrough
CT: control target
= control target key end

     0   :  { %s736_s15 = smov 0   ;;  %s889_s0 = inlined_call_operand.vmem [shape: bf16[128,512], index: 0, kind: input, shape index: {}]   ;;  %s890_s1 = inlined_call_operand.vmem [shape: f32[1,512], index: 1, kind: input, shape index: {}]   ;;  %s891_s2 = inlined_call_operand.vmem [shape: f32[1,512], index: 2, kind: input, shape index: {}]   ;;  %s892_s3 = inlined_call_operand.vmem [shape: bf16[128,128], index: 3, kind: input, shape index: {}]   ;;  %s893_s4 = inlined_call_operand.vmem [shape: f32[128,128], index: 4, kind: output, shape index: {}]  }
   0x1 LB: > { %s614_s16 = sadd.s32 4294967295, %s709_s15   ;;  %p618_p0 = scmp.ge.s32.totalorder %s709_s15, 1  ;;  %s709_s15 = sphi %s736_s15, %s14_s15  }
   0x2   : > { %p164_p1 = scmp.lt.s32.totalorder %s709_s15, 3 }
   0x4   : > { %p165_p2 = pnand %p618_p0, %p164_p1 }
   0x5   : > { %v695_v0 = vld [vmem:[%s892_s3] sm:$0xff] (!%p165_p2)   ;;  %s619_s19 = sshll.u32 (!%p165_p2), %s614_s16, 3  ;;  %v255_v1 = vlaneseq (!%p165_p2)  ;;  %v696_v2 = vld [vmem:[%s892_s3 + $0x8] sm:$0xff] (!%p165_p2)   ;;  %v697_v4 = vld [vmem:[%s892_s3 + $0x10] sm:$0xff] (!%p165_p2)  }
   0x6   : > { %168 = sbr.rel (%p165_p2) target bundleno = 279 (0x117), region = 36  ;;  %p192_p3 = scmp.lt.s32.totalorder (!%p165_p2), %s619_s19, 15  ;;  %647 = vmatprep.subr.bf16.mxu0 (!%p165_p2), %v695_v0  ;;  %671 = vmatprep.subr.bf16.mxu1 (!%p165_p2), %v695_v0  ;;  %v698_v5 = vld [vmem:[%s892_s3 + $0x18] sm:$0xff] (!%p165_p2)   ;;  %v253_v18 = vld [vmem:[%s890_s1] sm:$0xf] (!%p165_p2)  ;;  %v700_v47 = vld [vmem:[%s892_s3 + $0x28] sm:$0xff] (!%p165_p2)  }
   0x7   : > { %v256_v3 = vshrl.u32 (!%p165_p2), %v255_v1, 7  ;;  %648 = vmatpush3.bf16.msra.mxu0 (!%p165_p2), %v695_v0  ;;  %679 = vmatpush3.bf16.msra.mxu1 (!%p165_p2), %v695_v0  ;;  %v307_v19 = vld [vmem:[%s891_s2] sm:$0xf] (!%p165_p2) }
   0x8   : > { %649 = vmatprep.subr.bf16.mxu0 (!%p165_p2), %v696_v2  ;;  %672 = vmatprep.subr.bf16.mxu1 (!%p165_p2), %v696_v2  ;;  %v699_v29 = vld [vmem:[%s892_s3 + $0x20] sm:$0xff] (!%p165_p2)  }
   0x9   : > { %v257_v6 = vsub.s32 (!%p165_p2), 0, %v256_v3  ;;  %v261_v7 = vsub.s32 (!%p165_p2), 1, %v256_v3  ;;  %v265_v8 = vsub.s32 (!%p165_p2), 2, %v256_v3  ;;  %v269_v12 = vsub.s32 (!%p165_p2), 3, %v256_v3 }
   0xb   : > { %650 = vmatpush3.bf16.msra.mxu0 (!%p165_p2), %v696_v2  ;;  %680 = vmatpush3.bf16.msra.mxu1 (!%p165_p2), %v696_v2  ;;  %v777_v25 = vrot.slane (!%p165_p2), %v253_v18, %v257_v6  ;;  %v779_v26 = vrot.slane (!%p165_p2), %v253_v18, %v261_v7  ;;  %v781_v27 = vrot.slane (!%p165_p2), %v253_v18, %v265_v8  ;;  %v701_v2 = vld [vmem:[%s892_s3 + $0x30] sm:$0xff] (!%p165_p2)  }
   0xc   : > { %651 = vmatprep.subr.bf16.mxu0 (!%p165_p2), %v697_v4  ;;  %673 = vmatprep.subr.bf16.mxu1 (!%p165_p2), %v697_v4  ;;  %v787_v30 = vrot.slane (!%p165_p2), %v253_v18, %v269_v12  ;;  %v789_v31 = vrot.slane (!%p165_p2), %v307_v19, %v257_v6  ;;  %v791_v32 = vrot.slane (!%p165_p2), %v307_v19, %v261_v7 }
   0xd   : > { %s895_s19 = smov (!%p192_p3, %s619_s19), 15  ;;  %v803_v43 = vrot.slane %v307_v19, %v265_v8  ;;  %v805_v44 = vrot.slane %v307_v19, %v269_v12 }
   0xe   : > { %s634_s24 = sshll.u32 %s895_s19, 4  ;;  %s623_s17 = sshll.u32 %s895_s19, 3 }
   0xf   : > { %s762_s29 = scalar_lea.vmem %s889_s0, %s634_s24  ;;  %652 = vmatpush3.bf16.msra.mxu0 %v697_v4  ;;  %681 = vmatpush3.bf16.msra.mxu1 %v697_v4  ;;  %s202_s21 = scalar_lea.vmem %s893_s4, %s623_s17 }
  0x10   : > { %v205_v9 = vld [vmem:[%s762_s29] sm:$0xff]  ;;  %v206_v10 = vld [vmem:[%s762_s29 + $0x8] sm:$0xff]  ;;  %v207_v11 = vld [vmem:[%s762_s29 + $0x10] sm:$0xff]  ;;  %653 = vmatprep.subr.bf16.mxu0 %v698_v5  ;;  %674 = vmatprep.subr.bf16.mxu1 %v698_v5 }
  0x11   : > { %v208_v13 = vld [vmem:[%s762_s29 + $0x18] sm:$0xff]  ;;  %v221_v14 = vunpack.c.l.bf16 %v205_v9  ;;  %v222_v15 = vunpack.c.h.bf16 %v205_v9  ;;  %v223_v16 = vunpack.c.l.bf16 %v206_v10  ;;  %v224_v17 = vunpack.c.h.bf16 %v206_v10  ;;  %v775_v24 = vld [vmem:[%s762_s29 + $0x40] sm:$0xff]  ;;  %v214_v33 = vld [vmem:[%s762_s29 + $0x48] sm:$0xff] }
  0x12   : > { %v225_v20 = vunpack.c.l.bf16 %v207_v11  ;;  %v226_v21 = vunpack.c.h.bf16 %v207_v11  ;;  %v227_v22 = vunpack.c.l.bf16 %v208_v13  ;;  %v228_v23 = vunpack.c.h.bf16 %v208_v13  ;;  %v215_v56 = vld [vmem:[%s762_s29 + $0x50] sm:$0xff]  ;;  %v216_v61 = vld [vmem:[%s762_s29 + $0x58] sm:$0xff]  ;;  %v209_v7 = vld [vmem:[%s762_s29 + $0x20] sm:$0xff] }
  0x13   : > { %v237_v28 = vunpack.c.l.bf16 %v775_v24  ;;  %v238_v34 = vunpack.c.h.bf16 %v775_v24  ;;  %v275_v35 = vmul.f32 %v777_v25, %v221_v14  ;;  %v276_v36 = vmul.f32 %v779_v26, %v222_v15  ;;  %654 = vmatpush3.bf16.msra.mxu0 %v698_v5  ;;  %682 = vmatpush3.bf16.msra.mxu1 %v698_v5 }
  0x14   : > { %v277_v37 = vmul.f32 %v781_v27, %v223_v16  ;;  %v279_v38 = vmul.f32 %v777_v25, %v225_v20  ;;  %v278_v39 = vmul.f32 %v787_v30, %v224_v17  ;;  %v280_v40 = vmul.f32 %v779_v26, %v226_v21  ;;  %655 = vmatprep.subr.bf16.mxu0 %v699_v29  ;;  %v702_v20 = vld [vmem:[%s892_s3 + $0x38] sm:$0xff]  }
  0x15   : > { %v281_v41 = vmul.f32 %v781_v27, %v227_v22  ;;  %v282_v42 = vmul.f32 %v787_v30, %v228_v23  ;;  %v329_v45 = vadd.f32 %v789_v31, %v275_v35  ;;  %v239_v46 = vunpack.c.l.bf16 %v214_v33  ;;  %675 = vmatprep.subr.bf16.mxu1 %v699_v29 }
  0x16   : > { %v330_v48 = vadd.f32 %v791_v32, %v276_v36  ;;  %v333_v49 = vadd.f32 %v789_v31, %v279_v38  ;;  %v334_v50 = vadd.f32 %v791_v32, %v280_v40  ;;  %v240_v51 = vunpack.c.h.bf16 %v214_v33 }
  0x17   : > { %v331_v52 = vadd.f32 %v803_v43, %v277_v37  ;;  %v332_v53 = vadd.f32 %v805_v44, %v278_v39  ;;  %v335_v54 = vadd.f32 %v803_v43, %v281_v41  ;;  %v336_v55 = vadd.f32 %v805_v44, %v282_v42  ;;  %656 = vmatpush3.bf16.msra.mxu0 %v699_v29  ;;  %v210_v39 = vld [vmem:[%s762_s29 + $0x28] sm:$0xff] }
  0x18   : > { %v361_v57 = vmax.f32 %v329_v45, 0.0  ;;  %v362_v58 = vmax.f32 %v330_v48, 0.0  ;;  %v365_v59 = vmax.f32 %v333_v49, 0.0  ;;  %v366_v60 = vmax.f32 %v334_v50, 0.0  ;;  %683 = vmatpush3.bf16.msra.mxu1 %v699_v29  ;;  %657 = vmatprep.subr.bf16.mxu0 %v700_v47 }
  0x19   : > { %v363_v62 = vmax.f32 %v331_v52, 0.0  ;;  %v364_v63 = vmax.f32 %v332_v53, 0.0  ;;  %v367_v0 = vmax.f32 %v335_v54, 0.0  ;;  %v368_v1 = vmax.f32 %v336_v55, 0.0  ;;  %676 = vmatprep.subr.bf16.mxu1 %v700_v47 }
  0x1a   : > { %v393_v3 = vadd.f32 %v362_v58, %v361_v57  ;;  %v394_v4 = vadd.f32 %v366_v60, %v365_v59  ;;  %v241_v5 = vunpack.c.l.bf16 %v215_v56  ;;  %v242_v6 = vunpack.c.h.bf16 %v215_v56 }
  0x1b   : > { %v243_v8 = vunpack.c.l.bf16 %v216_v61  ;;  %v244_v9 = vunpack.c.h.bf16 %v216_v61  ;;  %v291_v10 = vmul.f32 %v777_v25, %v237_v28  ;;  %v292_v11 = vmul.f32 %v779_v26, %v238_v34  ;;  %658 = vmatpush3.bf16.msra.mxu0 %v700_v47 }
  0x1c   : > { %v401_v12 = vadd.f32 %v393_v3, %v363_v62  ;;  %v402_v13 = vadd.f32 %v394_v4, %v367_v0  ;;  %v293_v14 = vmul.f32 %v781_v27, %v239_v46  ;;  %v294_v15 = vmul.f32 %v787_v30, %v240_v51  ;;  %684 = vmatpush3.bf16.msra.mxu1 %v700_v47  ;;  %v211_v46 = vld [vmem:[%s762_s29 + $0x30] sm:$0xff]  ;;  %v212_v47 = vld [vmem:[%s762_s29 + $0x38] sm:$0xff] }
  0x1d   : > { %v295_v16 = vmul.f32 %v777_v25, %v241_v5  ;;  %v296_v17 = vmul.f32 %v779_v26, %v242_v6  ;;  %v297_v18 = vmul.f32 %v781_v27, %v243_v8  ;;  %v229_v19 = vunpack.c.l.bf16 %v209_v7  ;;  %659 = vmatprep.subr.bf16.mxu0 %v701_v2  ;;  %677 = vmatprep.subr.bf16.mxu1 %v701_v2 }
  0x1e   : > { %v409_v21 = vadd.f32 %v401_v12, %v364_v63  ;;  %v410_v22 = vadd.f32 %v402_v13, %v368_v1  ;;  %v298_v23 = vmul.f32 %v787_v30, %v244_v9  ;;  %v230_v24 = vunpack.c.h.bf16 %v209_v7 }
  0x1f   : > { %v345_v28 = vadd.f32 %v789_v31, %v291_v10  ;;  %v346_v29 = vadd.f32 %v791_v32, %v292_v11  ;;  %v347_v33 = vadd.f32 %v803_v43, %v293_v14  ;;  %v348_v34 = vadd.f32 %v805_v44, %v294_v15  ;;  %660 = vmatpush3.bf16.msra.mxu0 %v701_v2 }
  0x20   : > { %v417_v35 = vpack.c.bf16 %v410_v22, %v409_v21  ;;  %v349_v36 = vadd.f32 %v789_v31, %v295_v16  ;;  %v350_v37 = vadd.f32 %v791_v32, %v296_v17  ;;  %v351_v38 = vadd.f32 %v803_v43, %v297_v18  ;;  %685 = vmatpush3.bf16.msra.mxu1 %v701_v2  ;;  %v217_v16 = vld [vmem:[%s762_s29 + $0x60] sm:$0xff]  ;;  %v218_v21 = vld [vmem:[%s762_s29 + $0x68] sm:$0xff] }
  0x21   : > { %v352_v40 = vadd.f32 %v805_v44, %v298_v23  ;;  %v377_v41 = vmax.f32 %v345_v28, 0.0  ;;  %v378_v42 = vmax.f32 %v346_v29, 0.0  ;;  %v379_v45 = vmax.f32 %v347_v33, 0.0  ;;  %661 = vmatprep.subr.bf16.mxu0 %v702_v20  ;;  %678 = vmatprep.subr.bf16.mxu1 %v702_v20  ;;  %v219_v29 = vld [vmem:[%s762_s29 + $0x70] sm:$0xff]  ;;  %v220_v33 = vld [vmem:[%s762_s29 + $0x78] sm:$0xff] }
  0x22   : > { %v380_v48 = vmax.f32 %v348_v34, 0.0  ;;  %v381_v49 = vmax.f32 %v349_v36, 0.0  ;;  %v382_v50 = vmax.f32 %v350_v37, 0.0  ;;  %v383_v51 = vmax.f32 %v351_v38, 0.0  ;;  %663 = vmatprep.mubr.bf16.mxu0 %v417_v35 }
  0x23   : > { %v384_v52 = vmax.f32 %v352_v40, 0.0  ;;  %v397_v53 = vadd.f32 %v378_v42, %v377_v41  ;;  %v231_v54 = vunpack.c.l.bf16 %v210_v39  ;;  %v232_v55 = vunpack.c.h.bf16 %v210_v39  ;;  %662 = vmatpush3.bf16.msra.mxu0 %v702_v20 }
  0x24   : > { %v398_v56 = vadd.f32 %v382_v50, %v381_v49  ;;  %v233_v57 = vunpack.c.l.bf16 %v211_v46  ;;  %v234_v58 = vunpack.c.h.bf16 %v211_v46  ;;  %v235_v59 = vunpack.c.l.bf16 %v212_v47  ;;  %686 = vmatpush3.bf16.msra.mxu1 %v702_v20 }
  0x25   : > { %v405_v60 = vadd.f32 %v397_v53, %v379_v45  ;;  %v236_v61 = vunpack.c.h.bf16 %v212_v47  ;;  %v283_v62 = vmul.f32 %v777_v25, %v229_v19  ;;  %v284_v63 = vmul.f32 %v779_v26, %v230_v24 }
  0x26   : > { %v406_v0 = vadd.f32 %v398_v56, %v383_v51  ;;  %v285_v1 = vmul.f32 %v781_v27, %v231_v54  ;;  %v286_v2 = vmul.f32 %v787_v30, %v232_v55  ;;  %v287_v3 = vmul.f32 %v777_v25, %v233_v57 }
  0x27   : > { %v413_v4 = vadd.f32 %v405_v60, %v380_v48  ;;  %v288_v5 = vmul.f32 %v779_v26, %v234_v58  ;;  %v289_v6 = vmul.f32 %v781_v27, %v235_v59  ;;  %v290_v7 = vmul.f32 %v787_v30, %v236_v61 }
  0x28   : > { %v414_v8 = vadd.f32 %v406_v0, %v384_v52  ;;  %v337_v9 = vadd.f32 %v789_v31, %v283_v62  ;;  %v338_v10 = vadd.f32 %v791_v32, %v284_v63  ;;  %v339_v11 = vadd.f32 %v803_v43, %v285_v1 }
  0x29   : > { %v340_v12 = vadd.f32 %v805_v44, %v286_v2  ;;  %v341_v13 = vadd.f32 %v789_v31, %v287_v3  ;;  %v342_v14 = vadd.f32 %v791_v32, %v288_v5  ;;  %v343_v15 = vadd.f32 %v803_v43, %v289_v6 }
  0x2a   : > { %v419_v17 = vpack.c.bf16 %v414_v8, %v413_v4  ;;  %v344_v18 = vadd.f32 %v805_v44, %v290_v7  ;;  %v369_v19 = vmax.f32 %v337_v9, 0.0  ;;  %v370_v20 = vmax.f32 %v338_v10, 0.0 }
  0x2b   : > { %v371_v22 = vmax.f32 %v339_v11, 0.0  ;;  %v372_v23 = vmax.f32 %v340_v12, 0.0  ;;  %v373_v24 = vmax.f32 %v341_v13, 0.0  ;;  %v374_v28 = vmax.f32 %v342_v14, 0.0 }
  0x2c   : > { %667 = vmatprep.mubr.bf16.mxu1 %v419_v17  ;;  %v375_v34 = vmax.f32 %v343_v15, 0.0  ;;  %v376_v35 = vmax.f32 %v344_v18, 0.0  ;;  %v395_v36 = vadd.f32 %v370_v20, %v369_v19  ;;  %v245_v37 = vunpack.c.l.bf16 %v217_v16 }
  0x2d   : > { %v396_v38 = vadd.f32 %v374_v28, %v373_v24  ;;  %v246_v39 = vunpack.c.h.bf16 %v217_v16  ;;  %v247_v40 = vunpack.c.l.bf16 %v218_v21  ;;  %v248_v41 = vunpack.c.h.bf16 %v218_v21 }
  0x2e   : > { %v403_v42 = vadd.f32 %v395_v36, %v371_v22  ;;  %v249_v45 = vunpack.c.l.bf16 %v219_v29  ;;  %v250_v46 = vunpack.c.h.bf16 %v219_v29  ;;  %v251_v47 = vunpack.c.l.bf16 %v220_v33 }
  0x2f   : > { %v404_v48 = vadd.f32 %v396_v38, %v375_v34  ;;  %v252_v49 = vunpack.c.h.bf16 %v220_v33  ;;  %v299_v50 = vmul.f32 %v777_v25, %v245_v37  ;;  %v300_v51 = vmul.f32 %v779_v26, %v246_v39 }
  0x30   : > { %v411_v52 = vadd.f32 %v403_v42, %v372_v23  ;;  %v301_v53 = vmul.f32 %v781_v27, %v247_v40  ;;  %v302_v54 = vmul.f32 %v787_v30, %v248_v41  ;;  %v303_v55 = vmul.f32 %v777_v25, %v249_v45 }
  0x31   : > { %v412_v56 = vadd.f32 %v404_v48, %v376_v35  ;;  %v304_v57 = vmul.f32 %v779_v26, %v250_v46  ;;  %v305_v58 = vmul.f32 %v781_v27, %v251_v47  ;;  %v306_v59 = vmul.f32 %v787_v30, %v252_v49 }
  0x32   : > { %v353_v60 = vadd.f32 %v789_v31, %v299_v50  ;;  %v354_v61 = vadd.f32 %v791_v32, %v300_v51  ;;  %v355_v62 = vadd.f32 %v803_v43, %v301_v53  ;;  %v356_v63 = vadd.f32 %v805_v44, %v302_v54 }
  0x33   : > { %v418_v0 = vpack.c.bf16 %v412_v56, %v411_v52  ;;  %v357_v1 = vadd.f32 %v789_v31, %v303_v55  ;;  %v358_v25 = vadd.f32 %v791_v32, %v304_v57  ;;  %v359_v2 = vadd.f32 %v803_v43, %v305_v58 }
  0x34   : > { %v360_v26 = vadd.f32 %v805_v44, %v306_v59  ;;  %v385_v27 = vmax.f32 %v353_v60, 0.0  ;;  %v386_v3 = vmax.f32 %v354_v61, 0.0  ;;  %v387_v30 = vmax.f32 %v355_v62, 0.0 }
  0x35   : > { %664 = vmatmul.mubr.bf16.vlgmr.msra.gmra.mrb[0].mxu0 %v418_v0  ;;  %v389_v4 = vmax.f32 %v357_v1, 0.0  ;;  %v390_v5 = vmax.f32 %v358_v25, 0.0  ;;  %v391_v6 = vmax.f32 %v359_v2, 0.0  ;;  %v388_v7 = vmax.f32 %v356_v63, 0.0 }
  0x36   : > { %v399_v8 = vadd.f32 %v386_v3, %v385_v27  ;;  %v392_v9 = vmax.f32 %v360_v26, 0.0 }
  0x37   : > { %v400_v10 = vadd.f32 %v390_v5, %v389_v4 }
  0x38   : > { %v407_v11 = vadd.f32 %v399_v8, %v387_v30 }
  0x39   : > { %v408_v31 = vadd.f32 %v400_v10, %v391_v6 }
  0x3a   : > { %v415_v12 = vadd.f32 %v407_v11, %v388_v7 }
  0x3b   : > { %v416_v32 = vadd.f32 %v408_v31, %v392_v9 }
  0x3d   : > { %v420_v13 = vpack.c.bf16 %v416_v32, %v415_v12 }
  0x3f   : > { %668 = vmatmul.mubr.bf16.vlgmr.msra.gmra.mrb[0].mxu1 %v420_v13 }
 0x108   : > { %v665_v43 = vpop.f32.mrb[0].mxu0 }
 0x109   : > { %552 = vst [vmem:[%s202_s21 + $0x10] sm:$0xff] %v665_v43  ;;  %v519_v44 = vpop.f32.mrb[1].mxu0 }
 0x10a   : > { %550 = vst [vmem:[%s202_s21] sm:$0xff] %v519_v44  ;;  %v666_v14 = vpop.f32.mrb[2].mxu0 }
 0x10b   : > { %553 = vst [vmem:[%s202_s21 + $0x18] sm:$0xff] %v666_v14  ;;  %v522_v15 = vpop.f32.mrb[3].mxu0 }
 0x10c   : > { %551 = vst [vmem:[%s202_s21 + $0x8] sm:$0xff] %v522_v15 }
 0x112   : > { %v669_v16 = vpop.f32.mrb[0].mxu1 }
 0x113   : > { %556 = vst [vmem:[%s202_s21 + $0x30] sm:$0xff] %v669_v16  ;;  %v535_v17 = vpop.f32.mrb[1].mxu1 }
 0x114   : > { %554 = vst [vmem:[%s202_s21 + $0x20] sm:$0xff] %v535_v17  ;;  %v670_v18 = vpop.f32.mrb[2].mxu1 }
 0x115   : > { %557 = vst [vmem:[%s202_s21 + $0x38] sm:$0xff] %v670_v18  ;;  %v538_v19 = vpop.f32.mrb[3].mxu1 }
 0x116   : > { %555 = vst [vmem:[%s202_s21 + $0x28] sm:$0xff] %v538_v19 }
 0x117 PF: > { %s14_s15 = sadd.s32 1, %s709_s15  }
 0x118   : > { %p11_p4 = scmp.ge.s32.totalorder %s14_s15, 4  }
 0x11a   :  { %13 = sbr.rel (!%p11_p4) target bundleno = 1 (0x1), region = 66 }

</bundles_post_ra>
